<compile_context>
chip_gen: v5e
topology: v5e:2x2
jax: 0.10.0
libtpu: 0.0.40
codegen_flags: <defaults>
</compile_context>

<pallas_src>
import functools

import jax
import jax.numpy as jnp
from jax.experimental import pallas as pl
from jax.experimental.pallas import tpu as pltpu


_VMEM_LIMIT_BYTES = 64 * 1024 * 1024  # safe on v5e/v6e/v7x for these tile sizes


def _round_up(x, m):
    return ((x + m - 1) // m) * m


def _pad2d(x, rows, cols):
    return jnp.pad(x, ((0, rows - x.shape[0]), (0, cols - x.shape[1])))


# ----------------------------------------------------------------------------
# Kernel 1: feature transform  XW = X @ W   (computed once per layer).
#   x_ref : (tile_m, Fin_p)   bf16
#   w_ref : (Fin_p, Fout_p)   bf16
#   o_ref : (tile_m, Fout_p)  bf16
# ----------------------------------------------------------------------------
def xw_kernel(x_ref, w_ref, o_ref):
    o_ref[...] = jnp.dot(
        x_ref[...], w_ref[...], preferred_element_type=jnp.float32
    ).astype(o_ref.dtype)


def feature_transform(x, w, *, tile_m=256):
    n_pad, fin_pad = x.shape
    fout_pad = w.shape[1]
    tile_m = min(tile_m, n_pad)
    assert n_pad % tile_m == 0
    return pl.pallas_call(
        xw_kernel,
        out_shape=jax.ShapeDtypeStruct((n_pad, fout_pad), jnp.bfloat16),
        grid_spec=pltpu.PrefetchScalarGridSpec(
            num_scalar_prefetch=0,
            grid=(n_pad // tile_m,),
            in_specs=[
                pl.BlockSpec((tile_m, fin_pad), lambda i: (i, 0)),
                pl.BlockSpec((fin_pad, fout_pad), lambda i: (0, 0)),
            ],
            out_specs=pl.BlockSpec((tile_m, fout_pad), lambda i: (i, 0)),
        ),
        compiler_params=pltpu.CompilerParams(
            dimension_semantics=("parallel",),
            vmem_limit_bytes=_VMEM_LIMIT_BYTES,
        ),
    )(x, w)


# ----------------------------------------------------------------------------
# Kernel 2: aggregation  out = relu?( A_hat @ XW + b ), K-tiled accumulation.
#   a_ref  : (tile_n, tile_k)   bf16  adjacency tile (rows = dst, cols = src)
#   xw_ref : (tile_k, Fout_p)   bf16  transformed features for this K slice
#   b_ref  : (1, Fout_p)        f32   bias
#   o_ref  : (tile_n, Fout_p)         output tile
#   acc_ref: (tile_n, Fout_p)   f32   VMEM accumulator (persists over K)
# ----------------------------------------------------------------------------
def agg_kernel(a_ref, xw_ref, b_ref, o_ref, acc_ref, *, apply_relu):
    k = pl.program_id(1)

    @pl.when(k == 0)
    def _():
        acc_ref[...] = jnp.zeros_like(acc_ref)

    acc_ref[...] += jnp.dot(
        a_ref[...], xw_ref[...], preferred_element_type=jnp.float32
    )

    @pl.when(k == pl.num_programs(1) - 1)
    def _():
        out = acc_ref[...] + b_ref[...]
        if apply_relu:
            out = jnp.maximum(out, 0.0)
        o_ref[...] = out.astype(o_ref.dtype)


def aggregate(a_hat, xw, b, *, apply_relu, out_dtype, tile_n=256, tile_k=256):
    n_pad = a_hat.shape[0]
    fout_pad = xw.shape[1]
    tile_n = min(tile_n, n_pad)
    tile_k = min(tile_k, n_pad)
    assert n_pad % tile_n == 0 and n_pad % tile_k == 0

    kernel = functools.partial(agg_kernel, apply_relu=apply_relu)
    return pl.pallas_call(
        kernel,
        out_shape=jax.ShapeDtypeStruct((n_pad, fout_pad), out_dtype),
        grid_spec=pltpu.PrefetchScalarGridSpec(
            num_scalar_prefetch=0,
            grid=(n_pad // tile_n, n_pad // tile_k),
            in_specs=[
                pl.BlockSpec((tile_n, tile_k), lambda i, k: (i, k)),    # A tile
                pl.BlockSpec((tile_k, fout_pad), lambda i, k: (k, 0)),  # XW slice
                pl.BlockSpec((1, fout_pad), lambda i, k: (0, 0)),       # bias
            ],
            out_specs=pl.BlockSpec((tile_n, fout_pad), lambda i, k: (i, 0)),
            scratch_shapes=[pltpu.VMEM((tile_n, fout_pad), jnp.float32)],
        ),
        compiler_params=pltpu.CompilerParams(
            dimension_semantics=("parallel", "arbitrary"),
            vmem_limit_bytes=_VMEM_LIMIT_BYTES,
        ),
    )(a_hat, xw, b)


# ----------------------------------------------------------------------------
# Glue: GCN normalization (add remaining self-loops, symmetric deg^-1/2).
# ----------------------------------------------------------------------------
def build_normalized_adjacency(edge_index, num_nodes):
    src, dst = edge_index[0], edge_index[1]
    adj = jnp.zeros((num_nodes, num_nodes), jnp.float32)
    # message flows src -> dst, aggregation at dst => A[dst, src] = 1
    adj = adj.at[dst, src].set(1.0)
    # add *remaining* self loops (do not double-count existing ones)
    adj = jnp.maximum(adj, jnp.eye(num_nodes, dtype=jnp.float32))
    deg = jnp.sum(adj, axis=1)
    dinv = jnp.where(deg > 0, 1.0 / jnp.sqrt(deg), 0.0)
    return dinv[:, None] * adj * dinv[None, :]
    # TODO(synk): for large/sparse graphs replace dense A_hat with a CSR /
    # padded-neighbor-list formulation driven by scalar-prefetched row
    # pointers (dense is O(N^2) in both HBM traffic and FLOPs).


def init_gcn_params(key, in_channels, num_classes, num_hidden, num_layers):
    feature_list = [in_channels, num_hidden, num_classes]
    for _ in range(num_layers - 2):
        feature_list.insert(-1, num_hidden)
    params = []
    for i in range(len(feature_list) - 1):
        key, wk = jax.random.split(key)
        fin, fout = feature_list[i], feature_list[i + 1]
        # Glorot-uniform like PyG GCNConv, zero bias.
        limit = jnp.sqrt(6.0 / (fin + fout))
        w = jax.random.uniform(wk, (fin, fout), jnp.float32, -limit, limit)
        b = jnp.zeros((1, fout), jnp.float32)
        params.append((w, b))
    return params


def gcn_forward(x, edge_index, params, *, tile_n=256, tile_k=256):
    n = x.shape[0]
    num_classes = params[-1][0].shape[1]

    # Pad node dimension so it divides the tile sizes (powers of two assumed).
    tile_n = min(tile_n, _round_up(n, 128))
    tile_k = min(tile_k, _round_up(n, 128))
    n_pad = _round_up(n, max(tile_n, tile_k))
    assert n_pad % tile_n == 0 and n_pad % tile_k == 0

    a_hat = build_normalized_adjacency(edge_index, n)
    a_hat_p = _pad2d(a_hat, n_pad, n_pad).astype(jnp.bfloat16)

    fin0_pad = _round_up(params[0][0].shape[0], 128)
    h = _pad2d(x, n_pad, fin0_pad).astype(jnp.bfloat16)

    num_layers = len(params)
    for i, (w, b) in enumerate(params):
        fin, fout = w.shape
        fin_pad = _round_up(fin, 128)
        fout_pad = _round_up(fout, 128)
        w_p = _pad2d(w, fin_pad, fout_pad).astype(jnp.bfloat16)
        b_p = _pad2d(b, 1, fout_pad)  # stays f32, added to the f32 accumulator

        xw = feature_transform(h, w_p, tile_m=tile_n)       # (n_pad, fout_pad)

        is_hidden = i < num_layers - 1
        out_dtype = jnp.bfloat16 if is_hidden else jnp.float32
        h = aggregate(
            a_hat_p, xw, b_p,
            apply_relu=is_hidden, out_dtype=out_dtype,
            tile_n=tile_n, tile_k=tile_k,
        )
        # TODO(synk): F.dropout is identity in eval mode; training-mode dropout
        # (pltpu.prng_random_bits masking in the epilogue) not implemented.

    return h[:n, :num_classes].astype(jnp.float32)


# ----------------------------------------------------------------------------
# Plain-JAX reference (for a correctness sanity check).
# ----------------------------------------------------------------------------
def gcn_reference(x, edge_index, params):
    a_hat = build_normalized_adjacency(edge_index, x.shape[0])
    h = x
    for i, (w, b) in enumerate(params):
        h = a_hat @ (h @ w) + b
        if i < len(params) - 1:
            h = jnp.maximum(h, 0.0)
    return h


if __name__ == "__main__":
    # Small, deterministic problem: 16 nodes, 8 input features,
    # hidden=32, 4 classes, 3 GCN layers.
    N = 16
    IN_CHANNELS = 8
    NUM_HIDDEN = 32
    NUM_CLASSES = 4
    NUM_LAYERS = 3
    DROP_RATE = 0.5  # unused at inference

    key = jax.random.PRNGKey(0)
    kx, kp, ke = jax.random.split(key, 3)

    x = jax.random.normal(kx, (N, IN_CHANNELS), jnp.float32)

    # Deterministic undirected ring graph + a few chords (both directions).
    src = list(range(N)) + [0, 3, 5, 9]
    dst = [(i + 1) % N for i in range(N)] + [8, 11, 13, 2]
    src_all = src + dst
    dst_all = dst + src
    edge_index = jnp.array([src_all, dst_all], dtype=jnp.int32)  # [2, E]

    params = init_gcn_params(kp, IN_CHANNELS, NUM_CLASSES, NUM_HIDDEN, NUM_LAYERS)

    out = gcn_forward(x, edge_index, params)
    out = jax.block_until_ready(out)
    assert out.shape == (N, NUM_CLASSES), out.shape

    ref = gcn_reference(x, edge_index, params)
    assert bool(jnp.all(jnp.isfinite(out)))
    # bf16 matmul inputs -> generous tolerance vs. the f32 reference.
    assert bool(jnp.allclose(out, ref, atol=1e-1, rtol=1e-1)), (
        float(jnp.max(jnp.abs(out - ref)))
    )

    print("KERNEL_OK")
</pallas_src>

<mosaic_0001>
module attributes {stable_mosaic.version = 11 : i64} {
  func.func @xw_kernel(%arg0: i32, %arg1: memref<128x128xbf16, #tpu.memory_space<vmem>>, %arg2: memref<128x128xbf16, #tpu.memory_space<vmem>>, %arg3: memref<128x128xbf16, #tpu.memory_space<vmem>>) attributes {dimension_semantics = [#tpu.dimension_semantics<parallel>], iteration_bounds = array<i64: 1>, scalar_prefetch = 0 : i64, scratch_operands = 0 : i64, tpu.core_type = #tpu.core_type<tc>, window_params = [{transform_indices = @transform_0, window_bounds = array<i64: 128, 128>}, {pipeline_mode = #tpu.pipeline_mode<synchronous>, transform_indices = @transform_1, window_bounds = array<i64: 128, 128>}, {transform_indices = @transform_2, window_bounds = array<i64: 128, 128>}]} {
    %c0 = arith.constant 0 : index
    %c0_0 = arith.constant 0 : index
    %0 = vector.load %arg1[%c0, %c0_0] : memref<128x128xbf16, #tpu.memory_space<vmem>>, vector<128x128xbf16>
    %c0_1 = arith.constant 0 : index
    %c0_2 = arith.constant 0 : index
    %1 = vector.load %arg2[%c0_1, %c0_2] : memref<128x128xbf16, #tpu.memory_space<vmem>>, vector<128x128xbf16>
    %cst = arith.constant dense<0.000000e+00> : vector<128x128xf32>
    %2 = tpu.matmul %0, %1, %cst {dimension_numbers = #tpu.dot_dimension_numbers<[1], [0], [0], [1], [0, 0, 1, 1], [], []>} : vector<128x128xbf16>, vector<128x128xbf16>, vector<128x128xf32> -> vector<128x128xf32>
    %3 = arith.truncf %2 : vector<128x128xf32> to vector<128x128xbf16>
    %c0_3 = arith.constant 0 : index
    %c0_4 = arith.constant 0 : index
    %4 = vector.load %arg3[%c0_3, %c0_4] : memref<128x128xbf16, #tpu.memory_space<vmem>>, vector<128x128xbf16>
    tpu.vector_store %arg3[%c0_3, %c0_4], %3 {strides = array<i32>} : memref<128x128xbf16, #tpu.memory_space<vmem>>, vector<128x128xbf16>,
    return
  }
  func.func @transform_0(%arg0: i32) -> (i32, i32) {
    %c0_i32 = arith.constant 0 : i32
    %c0_i32_0 = arith.constant 0 : i32
    return %arg0, %c0_i32 : i32, i32
  }
  func.func @transform_1(%arg0: i32) -> (i32, i32) {
    %c0_i32 = arith.constant 0 : i32
    %c0_i32_0 = arith.constant 0 : i32
    %c0_i32_1 = arith.constant 0 : i32
    return %c0_i32, %c0_i32_0 : i32, i32
  }
  func.func @transform_2(%arg0: i32) -> (i32, i32) {
    %c0_i32 = arith.constant 0 : i32
    %c0_i32_0 = arith.constant 0 : i32
    return %arg0, %c0_i32 : i32, i32
  }
}

</mosaic_0001>

<bundles_post_ra>
// kernel: tpu_custom_call.1
= control target key start
LH: loop header
LB: loop body
LE: loop exit
PB: predicated region body
PF: predicated region fallthrough
CT: control target
= control target key end

     0   :  { %7 = vsyncpa [#allocation3], 0  ;;  %s545_s0 = inlined_call_operand.hbm [shape: bf16[128,128], index: 0, kind: input, shape index: {}]   ;;  %s546_s1 = inlined_call_operand.hbm [shape: bf16[128,128], index: 1, kind: input, shape index: {}]   ;;  %s547_s2 = inlined_call_operand.hbm [shape: bf16[128,128], index: 2, kind: output, shape index: {}]  }
   0x1   :  { %8 = vsyncpa [#allocation6], 0 }
   0x2   :  { %9 = vsyncpa [#allocation4], 0  ;;  %s14_s11 = sshll.u32 %s545_s0, 4  ;;  %s507_s12 = smov [#allocation2]   ;;  %s15_s11 = int_to_ptr.hbm [resolvable:$true] %s14_s11 }
   0x3   :  { %s16_s13 = sshll.u32 %s507_s12, 4  ;;  %s27_s16 = sshll.u32 %s546_s1, 4  ;;  %s17_s13 = int_to_ptr.vmem [resolvable:$true] %s16_s13  ;;  %s28_s16 = int_to_ptr.hbm [resolvable:$true] %s27_s16 }
   0x4   :  { %s508_s17 = smov 64   ;;  %s509_s18 = smov 4  }
   0x5   :  { %22 = dma.hbm_to_vmem [thread:$0]  %s15_s11, 1024, %s17_s13, [#allocation3], %s508_s17, %s508_s17, %s509_s18  }
   0x6   :  { %s510_s19 = smov [#allocation5]  }
   0x7   :  { %s29_s20 = sshll.u32 %s510_s19, 4  ;;  %s30_s20 = int_to_ptr.vmem [resolvable:$true] %s29_s20 }
   0x8   :  { %35 = dma.hbm_to_vmem [thread:$0]  %s28_s16, 1024, %s30_s20, [#allocation6], %s508_s17, %s508_s17, %s509_s18  }
   0x9   :  { %501 = dma.done.wait [#allocation3], 1024  }
   0xa   :  { %502 = vsyncadd [#allocation3], 4294966272 }
   0xb   :  { %503 = dma.done.wait [#allocation6], 1024  }
   0xc   :  { %504 = vsyncadd [#allocation6], 4294966272  ;;  %v352_v0 = vld [vmem:[#allocation5 + $0x38] sm:$0xff]  ;;  %v351_v1 = vld [vmem:[#allocation5 + $0x30] sm:$0xff]  ;;  %s511_s0 = smov [#allocation7]   ;;  %s259_s23 = sshll.u32 %s547_s2, 4  ;;  %s260_s23 = int_to_ptr.hbm [resolvable:$true] %s259_s23 }
   0xd   :  { %172 = vmatpush.bf16.msra.mxu0 %v352_v0  ;;  %400 = vmatpush.bf16.msra.mxu1 %v352_v0  ;;  %v350_v2 = vld [vmem:[#allocation5 + $0x28] sm:$0xff]  ;;  %v349_v3 = vld [vmem:[#allocation5 + $0x20] sm:$0xff]  ;;  %v348_v4 = vld [vmem:[#allocation5 + $0x18] sm:$0xff]  ;;  %s257_s1 = sshll.u32 %s511_s0, 4  ;;  %s258_s1 = int_to_ptr.vmem [resolvable:$true] %s257_s1 }
   0xe   :  { %401 = vmatpush.bf16.msra.mxu2 %v352_v0  ;;  %402 = vmatpush.bf16.msra.mxu3 %v352_v0  ;;  %v347_v5 = vld [vmem:[#allocation5 + $0x10] sm:$0xff]  ;;  %v346_v6 = vld [vmem:[#allocation5 + $0x8] sm:$0xff]  ;;  %v345_v7 = vld [vmem:[#allocation5] sm:$0xff] }
   0xf   :  { %v337_v8 = vld [vmem:[#allocation2] sm:$0xff]  ;;  %v339_v9 = vld [vmem:[#allocation2 + $0x10] sm:$0xff]  ;;  %v338_v12 = vld [vmem:[#allocation2 + $0x8] sm:$0xff] }
  0x10   :  { %v341_v10 = vld [vmem:[#allocation2 + $0x20] sm:$0xff]  ;;  %v343_v11 = vld [vmem:[#allocation2 + $0x30] sm:$0xff]  ;;  %v340_v13 = vld [vmem:[#allocation2 + $0x18] sm:$0xff] }
  0x11   :  { %173 = vmatpush.bf16.msra.mxu0 %v351_v1  ;;  %403 = vmatpush.bf16.msra.mxu1 %v351_v1  ;;  %v342_v14 = vld [vmem:[#allocation2 + $0x28] sm:$0xff]  ;;  %v344_v15 = vld [vmem:[#allocation2 + $0x38] sm:$0xff] }
  0x12   :  { %404 = vmatpush.bf16.msra.mxu2 %v351_v1  ;;  %405 = vmatpush.bf16.msra.mxu3 %v351_v1 }
  0x15   :  { %174 = vmatpush.bf16.msra.mxu0 %v350_v2  ;;  %406 = vmatpush.bf16.msra.mxu1 %v350_v2 }
  0x16   :  { %407 = vmatpush.bf16.msra.mxu2 %v350_v2  ;;  %408 = vmatpush.bf16.msra.mxu3 %v350_v2 }
  0x19   :  { %175 = vmatpush.bf16.msra.mxu0 %v349_v3  ;;  %409 = vmatpush.bf16.msra.mxu1 %v349_v3 }
  0x1a   :  { %410 = vmatpush.bf16.msra.mxu2 %v349_v3  ;;  %411 = vmatpush.bf16.msra.mxu3 %v349_v3 }
  0x1d   :  { %176 = vmatpush.bf16.msra.mxu0 %v348_v4  ;;  %412 = vmatpush.bf16.msra.mxu1 %v348_v4 }
  0x1e   :  { %413 = vmatpush.bf16.msra.mxu2 %v348_v4  ;;  %414 = vmatpush.bf16.msra.mxu3 %v348_v4 }
  0x21   :  { %177 = vmatpush.bf16.msra.mxu0 %v347_v5  ;;  %415 = vmatpush.bf16.msra.mxu1 %v347_v5 }
  0x22   :  { %416 = vmatpush.bf16.msra.mxu2 %v347_v5  ;;  %417 = vmatpush.bf16.msra.mxu3 %v347_v5 }
  0x25   :  { %178 = vmatpush.bf16.msra.mxu0 %v346_v6  ;;  %418 = vmatpush.bf16.msra.mxu1 %v346_v6 }
  0x26   :  { %419 = vmatpush.bf16.msra.mxu2 %v346_v6  ;;  %420 = vmatpush.bf16.msra.mxu3 %v346_v6 }
  0x29   :  { %179 = vmatpush.bf16.msra.mxu0 %v345_v7  ;;  %421 = vmatpush.bf16.msra.mxu1 %v345_v7 }
  0x2a   :  { %422 = vmatpush.bf16.msra.mxu2 %v345_v7  ;;  %423 = vmatpush.bf16.msra.mxu3 %v345_v7 }
  0x2c   :  { %180 = vmatmul.bf16.vlgmr.msra.gmra.mxu0 %v337_v8  ;;  %190 = vmatmul.bf16.vlgmr.msra.gmra.mxu1 %v339_v9 }
  0x2d   :  { %200 = vmatmul.bf16.vlgmr.msra.gmra.mxu2 %v341_v10  ;;  %210 = vmatmul.bf16.vlgmr.msra.gmra.mxu3 %v343_v11 }
  0x3c   :  { %185 = vmatmul.bf16.gmra.mxu0 %v338_v12  ;;  %195 = vmatmul.bf16.gmra.mxu1 %v340_v13 }
  0x3d   :  { %205 = vmatmul.bf16.gmra.mxu2 %v342_v14  ;;  %215 = vmatmul.bf16.gmra.mxu3 %v344_v15 }
  0xa9   :  { %v181_v16 = vpop.f32.mrf.mxu0  ;;  %v191_v17 = vpop.f32.mrf.mxu1 }
  0xb0   :  { %v201_v18 = vpop.f32.mrf.mxu2  ;;  %v211_v19 = vpop.f32.mrf.mxu3 }
  0xb1   :  { %v183_v20 = vpop.f32.mrf.mxu0  ;;  %v193_v21 = vpop.f32.mrf.mxu1 }
  0xb2   :  { %v356_v22 = vpack.c.bf16 %v183_v20, %v181_v16  ;;  %v366_v23 = vpack.c.bf16 %v193_v21, %v191_v17 }
  0xb4   :  { %357 = vst [vmem:[#allocation7] sm:$0xff] %v356_v22  }
  0xb5   :  { %394 = vst [vmem:[#allocation7 + $0x10] sm:$0xff] %v366_v23  }
  0xb8   :  { %v203_v24 = vpop.f32.mrf.mxu2  ;;  %v213_v25 = vpop.f32.mrf.mxu3 }
  0xb9   :  { %v376_v26 = vpack.c.bf16 %v203_v24, %v201_v18  ;;  %v386_v27 = vpack.c.bf16 %v213_v25, %v211_v19  ;;  %v186_v28 = vpop.f32.mrf.mxu0  ;;  %v196_v29 = vpop.f32.mrf.mxu1 }
  0xbb   :  { %396 = vst [vmem:[#allocation7 + $0x20] sm:$0xff] %v376_v26  }
  0xbc   :  { %398 = vst [vmem:[#allocation7 + $0x30] sm:$0xff] %v386_v27  }
  0xc0   :  { %v206_v30 = vpop.f32.mrf.mxu2  ;;  %v216_v31 = vpop.f32.mrf.mxu3 }
  0xc1   :  { %v188_v32 = vpop.f32.mrf.mxu0  ;;  %v198_v33 = vpop.f32.mrf.mxu1 }
  0xc2   :  { %v361_v34 = vpack.c.bf16 %v188_v32, %v186_v28  ;;  %v371_v35 = vpack.c.bf16 %v198_v33, %v196_v29 }
  0xc4   :  { %393 = vst [vmem:[#allocation7 + $0x8] sm:$0xff] %v361_v34  }
  0xc5   :  { %395 = vst [vmem:[#allocation7 + $0x18] sm:$0xff] %v371_v35  }
  0xc8   :  { %v208_v36 = vpop.f32.mrf.mxu2  ;;  %v218_v37 = vpop.f32.mrf.mxu3 }
  0xc9   :  { %v381_v38 = vpack.c.bf16 %v208_v36, %v206_v30  ;;  %v391_v39 = vpack.c.bf16 %v218_v37, %v216_v31 }
  0xcb   :  { %397 = vst [vmem:[#allocation7 + $0x28] sm:$0xff] %v381_v38  }
  0xcc   :  { %399 = vst [vmem:[#allocation7 + $0x38] sm:$0xff] %v391_v39  }
  0xcd   :  { %265 = dma.vmem_to_hbm [thread:$0]  %s258_s1, 1024, %s260_s23, [#allocation4], %s508_s17, %s508_s17, %s509_s18  }
  0xce   :  { %505 = dma.done.wait [#allocation4], 1024  }
  0xcf   :  { %506 = vsyncadd [#allocation4], 4294966272 }
  0xd0   :  { %270 = vsyncpa [#allocation3], 1 }
  0xd1   :  { %271 = vsyncpa [#allocation6], 1 }
  0xd2   :  { %272 = vsyncpa [#allocation4], 1 }

</bundles_post_ra>
